<compile_context>
chip_gen: v5e
topology: v5e:2x2
jax: 0.10.0
libtpu: 0.0.40
codegen_flags: <defaults>
</compile_context>

<pallas_src>
import functools

import jax
import jax.numpy as jnp
from jax import lax
from jax.experimental import pallas as pl
from jax.experimental.pallas import tpu as pltpu

FOCAL_ALPHA = 0.25   # self.focal_alpha in the PyTorch module (gamma = 2)
_EPS = 1e-7


# --------------------------------------------------------------------------
# Fused Pallas kernel: focal (labels) + line L1 + area EIoU + direction L1.
# Grid axis 0 = decoder layer (main + aux), marked "parallel".
# --------------------------------------------------------------------------

def _fused_criterion_kernel(scal_ref, logits_ref, tclass_ref, geom_ref, o_ref, *,
                            num_points, w_ce, w_line, w_area, w_dir):
    P = num_points
    num_boxes = scal_ref[0].astype(jnp.float32)     # clamp(sum GT, min=1), dynamic
    m_count = scal_ref[1]                           # true matched-row count (<= M_pad)

    # ---------------- labels: sigmoid focal loss (natural [B,Q,C] layout) ----
    x = logits_ref[...].astype(jnp.float32)                      # [B, Q, C]
    cls_iota = lax.broadcasted_iota(jnp.int32, x.shape, 2)       # class ids on lanes
    # one-hot built in-kernel; the no-object class (== num_classes) never
    # matches a class index in [0, C), so unmatched queries are all-zero rows.
    t = (cls_iota == tclass_ref[...]).astype(jnp.float32)
    e = jnp.exp(-jnp.abs(x))                                     # shared transcendental
    prob = jnp.where(x >= 0.0, 1.0, e) * pl.reciprocal(1.0 + e, approx=True)
    ce = jnp.maximum(x, 0.0) - x * t + jnp.log1p(e)              # stable BCE w/ logits
    d = prob - t                                                 # (1-p_t)^2 == (prob-t)^2 for t in {0,1}
    alpha_t = (1.0 - FOCAL_ALPHA) + (2.0 * FOCAL_ALPHA - 1.0) * t
    # sigmoid_focal_loss: mean(1).sum()/num_boxes; loss_labels multiplies by Q
    # -> Q factors cancel, plain sum remains.
    loss_ce = jnp.sum(alpha_t * ce * (d * d)) * (w_ce / num_boxes)

    # ---------------- packed geometry slab: [8P, M_pad] ----------------------
    # rows: [0,P)=pred x, [P,2P)=pred y, [2P,3P)=gt x, [3P,4P)=gt y,
    #       [4P,6P)=pred dirs (flattened), [6P,8P)=gt dirs (flattened)
    geom = geom_ref[...].astype(jnp.float32)
    px, py = geom[0 * P:1 * P], geom[1 * P:2 * P]
    gx, gy = geom[2 * P:3 * P], geom[3 * P:4 * P]
    pd, gd = geom[4 * P:6 * P], geom[6 * P:8 * P]

    m_pad = geom.shape[1]
    lane_p = lax.broadcasted_iota(jnp.int32, (P, m_pad), 1)
    valid_p = (lane_p < m_count).astype(jnp.float32)             # matched-row lane mask
    lane_d = lax.broadcasted_iota(jnp.int32, pd.shape, 1)
    valid_d = (lane_d < m_count).astype(jnp.float32)

    # ---------------- lines: L1 (sum |pred - gt|) ----------------------------
    l1_line = jnp.sum((jnp.abs(px - gx) + jnp.abs(py - gy)) * valid_p)
    loss_line = l1_line * (w_line / num_boxes)

    # ---------------- direction: L1 / P --------------------------------------
    loss_dir = jnp.sum(jnp.abs(pd - gd) * valid_d) * (w_dir / (num_points * num_boxes))

    # ---------------- area: EIoU over adjacent-point segment boxes -----------
    # Vectorized over all P-1 segments; x / y kept as planes (pure VPU ops).
    p1x, p2x = px[:-1], px[1:]
    p1y, p2y = py[:-1], py[1:]
    g1x, g2x = gx[:-1], gx[1:]
    g1y, g2y = gy[:-1], gy[1:]
    plx, phx = jnp.minimum(p1x, p2x), jnp.maximum(p1x, p2x)      # xyxy2bbox
    ply, phy = jnp.minimum(p1y, p2y), jnp.maximum(p1y, p2y)
    glx, ghx = jnp.minimum(g1x, g2x), jnp.maximum(g1x, g2x)
    gly, ghy = jnp.minimum(g1y, g2y), jnp.maximum(g1y, g2y)
    pw, ph_ = phx - plx, phy - ply
    gw, gh_ = ghx - glx, ghy - gly
    iw = jnp.maximum(jnp.minimum(phx, ghx) - jnp.maximum(plx, glx), 0.0)
    ih = jnp.maximum(jnp.minimum(phy, ghy) - jnp.maximum(ply, gly), 0.0)
    inter = iw * ih
    union = pw * ph_ + gw * gh_ - inter
    iou = inter * pl.reciprocal(union + _EPS, approx=True)
    cw = jnp.maximum(phx, ghx) - jnp.minimum(plx, glx)
    ch = jnp.maximum(phy, ghy) - jnp.minimum(ply, gly)
    c2 = cw * cw + ch * ch + _EPS
    rho2 = ((plx + phx) - (glx + ghx)) ** 2 * 0.25 \
         + ((ply + phy) - (gly + ghy)) ** 2 * 0.25
    # TODO(synk): eiou_loss is not defined in the reference source; using the
    # standard EIoU loss (1 - IoU + center/width/height penalties), sum-reduced.
    eiou = (1.0 - iou) + rho2 * pl.reciprocal(c2, approx=True) \
         + (pw - gw) ** 2 * pl.reciprocal(cw * cw + _EPS, approx=True) \
         + (ph_ - gh_) ** 2 * pl.reciprocal(ch * ch + _EPS, approx=True)
    loss_area = jnp.sum(eiou * valid_p[:-1]) * (w_area / (num_points * num_boxes))

    # ---------------- pack the four scalars into one lane-dense tile ---------
    lane_o = lax.broadcasted_iota(jnp.int32, o_ref.shape, 1)
    o_ref[...] = jnp.where(lane_o == 0, loss_ce,
                 jnp.where(lane_o == 1, loss_line,
                 jnp.where(lane_o == 2, loss_area,
                 jnp.where(lane_o == 3, loss_dir, 0.0))))


# --------------------------------------------------------------------------
# Plain-JAX glue (matching, tiny gathers, layout packing, one fused call).
# --------------------------------------------------------------------------

def _simple_matcher(layer_outputs, targets):
    # TODO(synk): the Hungarian matcher is built from an external MODELS
    # registry (config not provided); using deterministic identity matching.
    del layer_outputs
    indices = []
    for t in targets:
        n = int(t['lines'].shape[0])
        idx = jnp.arange(n, dtype=jnp.int32)
        indices.append((idx, idx))
    return indices


def _get_src_permutation_idx(indices):
    batch_idx = jnp.concatenate(
        [jnp.full_like(src, i) for i, (src, _) in enumerate(indices)])
    src_idx = jnp.concatenate([src for src, _ in indices])
    return batch_idx, src_idx


def _bucket_m(m):
    """Pad matched-row count to a power-of-two bucket (>= 8) to stabilize
    kernel shapes / vreg layouts across batches with different GT counts."""
    b = 8
    while b < m:
        b *= 2
    return b


def _layer_operands(layer_outputs, targets, indices, num_classes, m_pad):
    """Natural-layout logits, [B,Q,1] class map, packed [8P, m_pad] geometry."""
    logits = layer_outputs['pred_logits']
    B, Q, _ = logits.shape
    P = int(layer_outputs['pred_lines'].shape[2])
    batch_idx, src_idx = _get_src_permutation_idx(indices)
    M = int(src_idx.shape[0])

    # class-target map (num_classes == "no object")
    target_classes_o = jnp.concatenate(
        [t['labels'][j].astype(jnp.int32) for t, (_, j) in zip(targets, indices)])
    target_classes = jnp.full((B, Q), num_classes, dtype=jnp.int32)
    target_classes = target_classes.at[batch_idx, src_idx].set(target_classes_o)

    # matched line / direction rows (tiny XLA gathers), zero-padded to m_pad
    # TODO(synk): for large Q/M, gather rows inside the kernel via
    # PrefetchScalarGridSpec + pl.Element index_map instead of XLA gather.
    out_line = layer_outputs['pred_lines'][batch_idx, src_idx]          # [M, P, 2]
    tgt_line = jnp.concatenate(
        [t['lines'][i] for t, (_, i) in zip(targets, indices)], axis=0)
    out_dir = layer_outputs['pred_directions'][batch_idx, src_idx]      # [M, P, 2]
    tgt_dir = jnp.concatenate(
        [t['point_directions'][i] for t, (_, i) in zip(targets, indices)], axis=0)

    pad = ((0, m_pad - M), (0, 0), (0, 0))
    out_line = jnp.pad(out_line.astype(jnp.float32), pad)
    tgt_line = jnp.pad(tgt_line.astype(jnp.float32), pad)
    out_dir = jnp.pad(out_dir.astype(jnp.float32), pad)
    tgt_dir = jnp.pad(tgt_dir.astype(jnp.float32), pad)

    # single packed geometry slab per layer -> one DMA descriptor
    geom = jnp.concatenate([
        out_line[..., 0].T, out_line[..., 1].T,        # px, py   [P, m_pad]
        tgt_line[..., 0].T, tgt_line[..., 1].T,        # gx, gy   [P, m_pad]
        out_dir.reshape(m_pad, 2 * P).T,               # pd       [2P, m_pad]
        tgt_dir.reshape(m_pad, 2 * P).T,               # gd       [2P, m_pad]
    ], axis=0)                                         # [8P, m_pad]

    return logits, target_classes[:, :, None], geom


def _fused_losses_all_layers(layer_logits, layer_tclass, layer_geom,
                             num_boxes, m_count, num_points, weight_dict):
    logits_s = jnp.stack(layer_logits, axis=0)         # [L, B, Q, C] (f32 or bf16)
    tclass_s = jnp.stack(layer_tclass, axis=0)         # [L, B, Q, 1] int32
    geom_s = jnp.stack(layer_geom, axis=0)             # [L, 8P, m_pad] f32
    L, B, Q, C = logits_s.shape
    m_pad = geom_s.shape[-1]

    # dynamic scalars (SMEM prefetch) -> no retrace when GT count changes
    scalars = jnp.array([num_boxes, m_count], dtype=jnp.int32)

    kernel = functools.partial(
        _fused_criterion_kernel,
        num_points=num_points,
        w_ce=float(weight_dict['loss_ce']),
        w_line=float(weight_dict['loss_line']),
        w_area=float(weight_dict['loss_area']),
        w_dir=float(weight_dict['loss_direction']))

    # One pallas_call for main + all aux layers; each grid point handles one
    # layer and writes its own (8,128) packed-loss tile -> safe "parallel"
    # (uses both TensorCores on v7x, plain sequential loop elsewhere).
    # TODO(synk): if B*Q*C grows large, add grid axes (B, cdiv(Q, TILE_Q)) with
    # per-block partial sums (lane-dim >= 512, <= ~4 MiB blocks for v7x VMEM)
    # reduced by a trivial XLA sum afterwards.
    grid_spec = pltpu.PrefetchScalarGridSpec(
        num_scalar_prefetch=1,
        grid=(L,),
        in_specs=[
            pl.BlockSpec((None, B, Q, C), lambda l, s: (l, 0, 0, 0)),
            pl.BlockSpec((None, B, Q, 1), lambda l, s: (l, 0, 0, 0)),
            pl.BlockSpec((None, 8 * num_points, m_pad), lambda l, s: (l, 0, 0)),
        ],
        out_specs=pl.BlockSpec((None, 8, 128), lambda l, s: (l, 0, 0)),
    )
    packed = pl.pallas_call(
        kernel,
        grid_spec=grid_spec,
        out_shape=jax.ShapeDtypeStruct((L, 8, 128), jnp.float32),
        compiler_params=pltpu.CompilerParams(
            dimension_semantics=("parallel",)),
    )(scalars, logits_s, tclass_s, geom_s)
    return packed                                       # [L, 8, 128]


_NAME_MAP = {'labels': 'loss_ce', 'lines': 'loss_line',
             'area': 'loss_area', 'direction': 'loss_direction'}
_PACK_LANE = {'loss_ce': 0, 'loss_line': 1, 'loss_area': 2, 'loss_direction': 3}


def set_criterion_forward(outputs, targets, num_classes, weight_dict,
                          losses=('labels', 'lines', 'area', 'direction'),
                          enable_weight=False):
    # TODO(synk): enable_weight line-weight branch unimplemented (reference default False).
    del enable_weight
    layer_list = [outputs] + list(outputs.get('aux_outputs', []))
    P = int(outputs['pred_lines'].shape[2])

    M = sum(int(t['lines'].shape[0]) for t in targets)
    num_boxes = max(M, 1)                 # clamp(min=1); passed dynamically via SMEM
    m_pad = _bucket_m(M)

    layer_logits, layer_tclass, layer_geom = [], [], []
    for lo in layer_list:
        indices = _simple_matcher(lo, targets)        # matcher re-run per layer
        lg, tc, ge = _layer_operands(lo, targets, indices, num_classes, m_pad)
        layer_logits.append(lg)
        layer_tclass.append(tc)
        layer_geom.append(ge)

    packed = _fused_losses_all_layers(layer_logits, layer_tclass, layer_geom,
                                      num_boxes, M, P, weight_dict)

    result = {}
    for l in losses:
        name = _NAME_MAP[l]
        result[name] = packed[0, 0, _PACK_LANE[name]]
    for i in range(1, len(layer_list)):
        for l in losses:
            name = _NAME_MAP[l]
            result[f'{name}_{i - 1}'] = packed[i, 0, _PACK_LANE[name]]
    return result


# --------------------------------------------------------------------------
# Pure-JAX reference (exact reciprocals) for a loose-tolerance sanity check.
# --------------------------------------------------------------------------

def _reference_layer_losses(lo, targets, num_classes, num_boxes, weight_dict):
    indices = _simple_matcher(lo, targets)
    batch_idx, src_idx = _get_src_permutation_idx(indices)
    logits = lo['pred_logits'].astype(jnp.float32)
    B, Q, C = logits.shape
    P = int(lo['pred_lines'].shape[2])

    tco = jnp.concatenate([t['labels'][j].astype(jnp.int32)
                           for t, (_, j) in zip(targets, indices)])
    tclass = jnp.full((B, Q), num_classes, jnp.int32).at[batch_idx, src_idx].set(tco)
    onehot = jax.nn.one_hot(tclass, C + 1, dtype=jnp.float32)[..., :C]
    prob = jax.nn.sigmoid(logits)
    ce = jnp.maximum(logits, 0.0) - logits * onehot + jnp.log1p(jnp.exp(-jnp.abs(logits)))
    p_t = prob * onehot + (1.0 - prob) * (1.0 - onehot)
    alpha_t = FOCAL_ALPHA * onehot + (1.0 - FOCAL_ALPHA) * (1.0 - onehot)
    loss_ce = jnp.sum(alpha_t * ce * (1.0 - p_t) ** 2) / num_boxes * weight_dict['loss_ce']

    out_line = lo['pred_lines'][batch_idx, src_idx].astype(jnp.float32)
    tgt_line = jnp.concatenate([t['lines'][i] for t, (_, i) in zip(targets, indices)],
                               0).astype(jnp.float32)
    out_dir = lo['pred_directions'][batch_idx, src_idx].astype(jnp.float32)
    tgt_dir = jnp.concatenate([t['point_directions'][i] for t, (_, i) in zip(targets, indices)],
                              0).astype(jnp.float32)

    loss_line = jnp.sum(jnp.abs(out_line - tgt_line)) / num_boxes * weight_dict['loss_line']
    loss_dir = jnp.sum(jnp.abs(out_dir - tgt_dir)) / P / num_boxes * weight_dict['loss_direction']

    p1, p2 = out_line[:, :-1, :], out_line[:, 1:, :]
    g1, g2 = tgt_line[:, :-1, :], tgt_line[:, 1:, :]
    plx, phx = jnp.minimum(p1[..., 0], p2[..., 0]), jnp.maximum(p1[..., 0], p2[..., 0])
    ply, phy = jnp.minimum(p1[..., 1], p2[..., 1]), jnp.maximum(p1[..., 1], p2[..., 1])
    glx, ghx = jnp.minimum(g1[..., 0], g2[..., 0]), jnp.maximum(g1[..., 0], g2[..., 0])
    gly, ghy = jnp.minimum(g1[..., 1], g2[..., 1]), jnp.maximum(g1[..., 1], g2[..., 1])
    pw, ph_ = phx - plx, phy - ply
    gw, gh_ = ghx - glx, ghy - gly
    iw = jnp.maximum(jnp.minimum(phx, ghx) - jnp.maximum(plx, glx), 0.0)
    ih = jnp.maximum(jnp.minimum(phy, ghy) - jnp.maximum(ply, gly), 0.0)
    inter = iw * ih
    union = pw * ph_ + gw * gh_ - inter
    iou = inter / (union + _EPS)
    cw = jnp.maximum(phx, ghx) - jnp.minimum(plx, glx)
    ch = jnp.maximum(phy, ghy) - jnp.minimum(ply, gly)
    c2 = cw * cw + ch * ch + _EPS
    rho2 = ((plx + phx) - (glx + ghx)) ** 2 * 0.25 + ((ply + phy) - (gly + ghy)) ** 2 * 0.25
    eiou = (1.0 - iou) + rho2 / c2 + (pw - gw) ** 2 / (cw * cw + _EPS) \
         + (ph_ - gh_) ** 2 / (ch * ch + _EPS)
    loss_area = jnp.sum(eiou) / P / num_boxes * weight_dict['loss_area']

    return {'loss_ce': loss_ce, 'loss_line': loss_line,
            'loss_area': loss_area, 'loss_direction': loss_dir}


# --------------------------------------------------------------------------

if __name__ == "__main__":
    key = jax.random.PRNGKey(0)
    B, Q, C, P = 2, 8, 4, 8
    keys = jax.random.split(key, 13)

    def make_layer(k0, k1, k2):
        return {'pred_logits': jax.random.normal(k0, (B, Q, C), jnp.float32),
                'pred_lines': jax.random.uniform(k1, (B, Q, P, 2), jnp.float32),
                'pred_directions': jax.random.normal(k2, (B, Q, P, 2), jnp.float32)}

    outputs = make_layer(keys[0], keys[1], keys[2])
    outputs['aux_outputs'] = [make_layer(keys[3], keys[4], keys[5]),
                              make_layer(keys[6], keys[7], keys[8])]
    targets = [
        {'labels': jnp.array([0, 2, 1], jnp.int32),
         'lines': jax.random.uniform(keys[9], (3, P, 2), jnp.float32),
         'point_directions': jax.random.normal(keys[10], (3, P, 2), jnp.float32)},
        {'labels': jnp.array([3, 1], jnp.int32),
         'lines': jax.random.uniform(keys[11], (2, P, 2), jnp.float32),
         'point_directions': jax.random.normal(keys[12], (2, P, 2), jnp.float32)},
    ]
    weight_dict = {'loss_ce': 2.0, 'loss_line': 5.0,
                   'loss_area': 1.0, 'loss_direction': 0.5}

    losses = set_criterion_forward(outputs, targets, C, weight_dict)
    for v in losses.values():
        jax.block_until_ready(v)

    # loose-tolerance check vs pure-JAX reference (kernel uses approx EUP rcp)
    num_boxes = float(max(sum(int(t['lines'].shape[0]) for t in targets), 1))
    layer_list = [outputs] + outputs['aux_outputs']
    for li, lo in enumerate(layer_list):
        ref = _reference_layer_losses(lo, targets, C, num_boxes, weight_dict)
        for name, ref_val in ref.items():
            got = losses[name] if li == 0 else losses[f'{name}_{li - 1}']
            assert jnp.allclose(got, ref_val, rtol=1e-1, atol=1e-2), \
                (name, li, float(got), float(ref_val))

    print("KERNEL_OK")
</pallas_src>

<mosaic_0001>
module attributes {stable_mosaic.version = 11 : i64} {
  func.func @_fused_criterion_kernel(%arg0: i32, %arg1: memref<2xi32, #tpu.memory_space<smem>>, %arg2: memref<1x2x8x4xf32, #tpu.memory_space<vmem>>, %arg3: memref<1x2x8x1xi32, #tpu.memory_space<vmem>>, %arg4: memref<1x64x8xf32, #tpu.memory_space<vmem>>, %arg5: memref<1x8x128xf32, #tpu.memory_space<vmem>>) attributes {dimension_semantics = [#tpu.dimension_semantics<parallel>], iteration_bounds = array<i64: 3>, scalar_prefetch = 1 : i64, scratch_operands = 0 : i64, tpu.core_type = #tpu.core_type<tc>, window_params = [{transform_indices = @transform_0, window_bounds = array<i64: 1, 2, 8, 4>}, {transform_indices = @transform_1, window_bounds = array<i64: 1, 2, 8, 1>}, {transform_indices = @transform_2, window_bounds = array<i64: 1, 64, 8>}, {transform_indices = @transform_3, window_bounds = array<i64: 1, 8, 128>}]} {
    %c0 = arith.constant 0 : index
    %0 = memref.load %arg1[%c0] : memref<2xi32, #tpu.memory_space<smem>>
    %1 = arith.sitofp %0 : i32 to f32
    %c1 = arith.constant 1 : index
    %2 = memref.load %arg1[%c1] : memref<2xi32, #tpu.memory_space<smem>>
    %c0_0 = arith.constant 0 : index
    %c0_1 = arith.constant 0 : index
    %c0_2 = arith.constant 0 : index
    %c0_3 = arith.constant 0 : index
    %3 = vector.load %arg2[%c0_0, %c0_1, %c0_2, %c0_3] : memref<1x2x8x4xf32, #tpu.memory_space<vmem>>, vector<1x2x8x4xf32>
    %4 = vector.shape_cast %3 : vector<1x2x8x4xf32> to vector<2x8x4xf32>
    %5 = tpu.iota {dimensions = array<i32: 2>} : vector<2x8x4xi32>
    %c0_4 = arith.constant 0 : index
    %c0_5 = arith.constant 0 : index
    %c0_6 = arith.constant 0 : index
    %c0_7 = arith.constant 0 : index
    %6 = vector.load %arg3[%c0_4, %c0_5, %c0_6, %c0_7] : memref<1x2x8x1xi32, #tpu.memory_space<vmem>>, vector<1x2x8x1xi32>
    %7 = vector.shape_cast %6 : vector<1x2x8x1xi32> to vector<2x8x1xi32>
    %8 = vector.broadcast %7 : vector<2x8x1xi32> to vector<2x8x4xi32>
    %9 = arith.cmpi eq, %5, %8 : vector<2x8x4xi32>
    %10 = arith.extui %9 : vector<2x8x4xi1> to vector<2x8x4xi32>
    %11 = arith.sitofp %10 : vector<2x8x4xi32> to vector<2x8x4xf32>
    %12 = math.absf %4 : vector<2x8x4xf32>
    %cst = arith.constant 0.000000e+00 : f32
    %13 = vector.broadcast %cst : f32 to vector<2x8x4xf32>
    %14 = arith.subf %13, %12 : vector<2x8x4xf32>
    %15 = math.exp %14 : vector<2x8x4xf32>
    %cst_8 = arith.constant 0.000000e+00 : f32
    %16 = vector.broadcast %cst_8 : f32 to vector<2x8x4xf32>
    %17 = arith.cmpf oge, %4, %16 : vector<2x8x4xf32>
    %cst_9 = arith.constant 1.000000e+00 : f32
    %18 = vector.broadcast %cst_9 : f32 to vector<2x8x4xf32>
    %19 = arith.select %17, %18, %15 : vector<2x8x4xi1>, vector<2x8x4xf32>
    %cst_10 = arith.constant 1.000000e+00 : f32
    %20 = vector.broadcast %cst_10 : f32 to vector<2x8x4xf32>
    %21 = arith.addf %20, %15 : vector<2x8x4xf32>
    %22 = tpu.reciprocal %21 {approx = true} : vector<2x8x4xf32> -> vector<2x8x4xf32>
    %23 = arith.mulf %19, %22 : vector<2x8x4xf32>
    %cst_11 = arith.constant 0.000000e+00 : f32
    %24 = vector.broadcast %cst_11 : f32 to vector<2x8x4xf32>
    %25 = arith.maximumf %4, %24 : vector<2x8x4xf32>
    %26 = arith.mulf %4, %11 : vector<2x8x4xf32>
    %27 = arith.subf %25, %26 : vector<2x8x4xf32>
    %28 = math.log1p %15 : vector<2x8x4xf32>
    %29 = arith.addf %27, %28 : vector<2x8x4xf32>
    %30 = arith.subf %23, %11 : vector<2x8x4xf32>
    %cst_12 = arith.constant -5.000000e-01 : f32
    %31 = vector.broadcast %cst_12 : f32 to vector<2x8x4xf32>
    %32 = arith.mulf %31, %11 : vector<2x8x4xf32>
    %cst_13 = arith.constant 7.500000e-01 : f32
    %33 = vector.broadcast %cst_13 : f32 to vector<2x8x4xf32>
    %34 = arith.addf %33, %32 : vector<2x8x4xf32>
    %35 = arith.mulf %34, %29 : vector<2x8x4xf32>
    %36 = arith.mulf %30, %30 : vector<2x8x4xf32>
    %37 = arith.mulf %35, %36 : vector<2x8x4xf32>
    %38 = vector.shape_cast %37 : vector<2x8x4xf32> to vector<1x2x8x4xf32>
    %cst_14 = arith.constant dense<0.000000e+00> : vector<1xf32>
    %39 = vector.multi_reduction <add>, %38, %cst_14 [1, 2, 3] : vector<1x2x8x4xf32> to vector<1xf32>
    %40 = vector.shape_cast %39 : vector<1xf32> to vector<1x1x1x1xf32>
    %41 = vector.extract %40[0, 0, 0, 0] : f32 from vector<1x1x1x1xf32>
    %cst_15 = arith.constant 2.000000e+00 : f32
    %42 = arith.divf %cst_15, %1 : f32
    %43 = arith.mulf %41, %42 : f32
    %c0_16 = arith.constant 0 : index
    %c0_17 = arith.constant 0 : index
    %c0_18 = arith.constant 0 : index
    %44 = vector.load %arg4[%c0_16, %c0_17, %c0_18] : memref<1x64x8xf32, #tpu.memory_space<vmem>>, vector<1x64x8xf32>
    %45 = vector.shape_cast %44 : vector<1x64x8xf32> to vector<64x8xf32>
    %46 = vector.extract_strided_slice %45 {offsets = [0, 0], sizes = [8, 8], strides = [1, 1]} : vector<64x8xf32> to vector<8x8xf32>
    %47 = vector.extract_strided_slice %45 {offsets = [8, 0], sizes = [8, 8], strides = [1, 1]} : vector<64x8xf32> to vector<8x8xf32>
    %48 = vector.extract_strided_slice %45 {offsets = [16, 0], sizes = [8, 8], strides = [1, 1]} : vector<64x8xf32> to vector<8x8xf32>
    %49 = vector.extract_strided_slice %45 {offsets = [24, 0], sizes = [8, 8], strides = [1, 1]} : vector<64x8xf32> to vector<8x8xf32>
    %50 = vector.extract_strided_slice %45 {offsets = [32, 0], sizes = [16, 8], strides = [1, 1]} : vector<64x8xf32> to vector<16x8xf32>
    %51 = vector.extract_strided_slice %45 {offsets = [48, 0], sizes = [16, 8], strides = [1, 1]} : vector<64x8xf32> to vector<16x8xf32>
    %52 = tpu.iota {dimensions = array<i32: 1>} : vector<8x8xi32>
    %53 = vector.broadcast %2 : i32 to vector<8x8xi32>
    %54 = arith.cmpi slt, %52, %53 : vector<8x8xi32>
    %55 = arith.extui %54 : vector<8x8xi1> to vector<8x8xi32>
    %56 = arith.sitofp %55 : vector<8x8xi32> to vector<8x8xf32>
    %57 = tpu.iota {dimensions = array<i32: 1>} : vector<16x8xi32>
    %58 = vector.broadcast %2 : i32 to vector<16x8xi32>
    %59 = arith.cmpi slt, %57, %58 : vector<16x8xi32>
    %60 = arith.extui %59 : vector<16x8xi1> to vector<16x8xi32>
    %61 = arith.sitofp %60 : vector<16x8xi32> to vector<16x8xf32>
    %62 = arith.subf %46, %48 : vector<8x8xf32>
    %63 = math.absf %62 : vector<8x8xf32>
    %64 = arith.subf %47, %49 : vector<8x8xf32>
    %65 = math.absf %64 : vector<8x8xf32>
    %66 = arith.addf %63, %65 : vector<8x8xf32>
    %67 = arith.mulf %66, %56 : vector<8x8xf32>
    %68 = vector.shape_cast %67 : vector<8x8xf32> to vector<1x8x8xf32>
    %cst_19 = arith.constant dense<0.000000e+00> : vector<1xf32>
    %69 = vector.multi_reduction <add>, %68, %cst_19 [1, 2] : vector<1x8x8xf32> to vector<1xf32>
    %70 = vector.shape_cast %69 : vector<1xf32> to vector<1x1x1xf32>
    %71 = vector.extract %70[0, 0, 0] : f32 from vector<1x1x1xf32>
    %cst_20 = arith.constant 5.000000e+00 : f32
    %72 = arith.divf %cst_20, %1 : f32
    %73 = arith.mulf %71, %72 : f32
    %74 = arith.subf %50, %51 : vector<16x8xf32>
    %75 = math.absf %74 : vector<16x8xf32>
    %76 = arith.mulf %75, %61 : vector<16x8xf32>
    %77 = vector.shape_cast %76 : vector<16x8xf32> to vector<1x16x8xf32>
    %cst_21 = arith.constant dense<0.000000e+00> : vector<1xf32>
    %78 = vector.multi_reduction <add>, %77, %cst_21 [1, 2] : vector<1x16x8xf32> to vector<1xf32>
    %79 = vector.shape_cast %78 : vector<1xf32> to vector<1x1x1xf32>
    %80 = vector.extract %79[0, 0, 0] : f32 from vector<1x1x1xf32>
    %cst_22 = arith.constant 8.000000e+00 : f32
    %81 = arith.mulf %cst_22, %1 : f32
    %cst_23 = arith.constant 5.000000e-01 : f32
    %82 = arith.divf %cst_23, %81 : f32
    %83 = arith.mulf %80, %82 : f32
    %84 = vector.extract_strided_slice %46 {offsets = [0, 0], sizes = [7, 8], strides = [1, 1]} : vector<8x8xf32> to vector<7x8xf32>
    %85 = vector.extract_strided_slice %46 {offsets = [1, 0], sizes = [7, 8], strides = [1, 1]} : vector<8x8xf32> to vector<7x8xf32>
    %86 = vector.extract_strided_slice %47 {offsets = [0, 0], sizes = [7, 8], strides = [1, 1]} : vector<8x8xf32> to vector<7x8xf32>
    %87 = vector.extract_strided_slice %47 {offsets = [1, 0], sizes = [7, 8], strides = [1, 1]} : vector<8x8xf32> to vector<7x8xf32>
    %88 = vector.extract_strided_slice %48 {offsets = [0, 0], sizes = [7, 8], strides = [1, 1]} : vector<8x8xf32> to vector<7x8xf32>
    %89 = vector.extract_strided_slice %48 {offsets = [1, 0], sizes = [7, 8], strides = [1, 1]} : vector<8x8xf32> to vector<7x8xf32>
    %90 = vector.extract_strided_slice %49 {offsets = [0, 0], sizes = [7, 8], strides = [1, 1]} : vector<8x8xf32> to vector<7x8xf32>
    %91 = vector.extract_strided_slice %49 {offsets = [1, 0], sizes = [7, 8], strides = [1, 1]} : vector<8x8xf32> to vector<7x8xf32>
    %92 = arith.minimumf %84, %85 : vector<7x8xf32>
    %93 = arith.maximumf %84, %85 : vector<7x8xf32>
    %94 = arith.minimumf %86, %87 : vector<7x8xf32>
    %95 = arith.maximumf %86, %87 : vector<7x8xf32>
    %96 = arith.minimumf %88, %89 : vector<7x8xf32>
    %97 = arith.maximumf %88, %89 : vector<7x8xf32>
    %98 = arith.minimumf %90, %91 : vector<7x8xf32>
    %99 = arith.maximumf %90, %91 : vector<7x8xf32>
    %100 = arith.subf %93, %92 : vector<7x8xf32>
    %101 = arith.subf %95, %94 : vector<7x8xf32>
    %102 = arith.subf %97, %96 : vector<7x8xf32>
    %103 = arith.subf %99, %98 : vector<7x8xf32>
    %104 = arith.minimumf %93, %97 : vector<7x8xf32>
    %105 = arith.maximumf %92, %96 : vector<7x8xf32>
    %106 = arith.subf %104, %105 : vector<7x8xf32>
    %cst_24 = arith.constant 0.000000e+00 : f32
    %107 = vector.broadcast %cst_24 : f32 to vector<7x8xf32>
    %108 = arith.maximumf %106, %107 : vector<7x8xf32>
    %109 = arith.minimumf %95, %99 : vector<7x8xf32>
    %110 = arith.maximumf %94, %98 : vector<7x8xf32>
    %111 = arith.subf %109, %110 : vector<7x8xf32>
    %cst_25 = arith.constant 0.000000e+00 : f32
    %112 = vector.broadcast %cst_25 : f32 to vector<7x8xf32>
    %113 = arith.maximumf %111, %112 : vector<7x8xf32>
    %114 = arith.mulf %108, %113 : vector<7x8xf32>
    %115 = arith.mulf %100, %101 : vector<7x8xf32>
    %116 = arith.mulf %102, %103 : vector<7x8xf32>
    %117 = arith.addf %115, %116 : vector<7x8xf32>
    %118 = arith.subf %117, %114 : vector<7x8xf32>
    %cst_26 = arith.constant 1.000000e-07 : f32
    %119 = vector.broadcast %cst_26 : f32 to vector<7x8xf32>
    %120 = arith.addf %118, %119 : vector<7x8xf32>
    %121 = tpu.reciprocal %120 {approx = true} : vector<7x8xf32> -> vector<7x8xf32>
    %122 = arith.mulf %114, %121 : vector<7x8xf32>
    %123 = arith.maximumf %93, %97 : vector<7x8xf32>
    %124 = arith.minimumf %92, %96 : vector<7x8xf32>
    %125 = arith.subf %123, %124 : vector<7x8xf32>
    %126 = arith.maximumf %95, %99 : vector<7x8xf32>
    %127 = arith.minimumf %94, %98 : vector<7x8xf32>
    %128 = arith.subf %126, %127 : vector<7x8xf32>
    %129 = arith.mulf %125, %125 : vector<7x8xf32>
    %130 = arith.mulf %128, %128 : vector<7x8xf32>
    %131 = arith.addf %129, %130 : vector<7x8xf32>
    %cst_27 = arith.constant 1.000000e-07 : f32
    %132 = vector.broadcast %cst_27 : f32 to vector<7x8xf32>
    %133 = arith.addf %131, %132 : vector<7x8xf32>
    %134 = arith.addf %92, %93 : vector<7x8xf32>
    %135 = arith.addf %96, %97 : vector<7x8xf32>
    %136 = arith.subf %134, %135 : vector<7x8xf32>
    %137 = arith.mulf %136, %136 : vector<7x8xf32>
    %cst_28 = arith.constant 2.500000e-01 : f32
    %138 = vector.broadcast %cst_28 : f32 to vector<7x8xf32>
    %139 = arith.mulf %137, %138 : vector<7x8xf32>
    %140 = arith.addf %94, %95 : vector<7x8xf32>
    %141 = arith.addf %98, %99 : vector<7x8xf32>
    %142 = arith.subf %140, %141 : vector<7x8xf32>
    %143 = arith.mulf %142, %142 : vector<7x8xf32>
    %cst_29 = arith.constant 2.500000e-01 : f32
    %144 = vector.broadcast %cst_29 : f32 to vector<7x8xf32>
    %145 = arith.mulf %143, %144 : vector<7x8xf32>
    %146 = arith.addf %139, %145 : vector<7x8xf32>
    %cst_30 = arith.constant 1.000000e+00 : f32
    %147 = vector.broadcast %cst_30 : f32 to vector<7x8xf32>
    %148 = arith.subf %147, %122 : vector<7x8xf32>
    %149 = tpu.reciprocal %133 {approx = true} : vector<7x8xf32> -> vector<7x8xf32>
    %150 = arith.mulf %146, %149 : vector<7x8xf32>
    %151 = arith.addf %148, %150 : vector<7x8xf32>
    %152 = arith.subf %100, %102 : vector<7x8xf32>
    %153 = arith.mulf %152, %152 : vector<7x8xf32>
    %154 = arith.mulf %125, %125 : vector<7x8xf32>
    %cst_31 = arith.constant 1.000000e-07 : f32
    %155 = vector.broadcast %cst_31 : f32 to vector<7x8xf32>
    %156 = arith.addf %154, %155 : vector<7x8xf32>
    %157 = tpu.reciprocal %156 {approx = true} : vector<7x8xf32> -> vector<7x8xf32>
    %158 = arith.mulf %153, %157 : vector<7x8xf32>
    %159 = arith.addf %151, %158 : vector<7x8xf32>
    %160 = arith.subf %101, %103 : vector<7x8xf32>
    %161 = arith.mulf %160, %160 : vector<7x8xf32>
    %162 = arith.mulf %128, %128 : vector<7x8xf32>
    %cst_32 = arith.constant 1.000000e-07 : f32
    %163 = vector.broadcast %cst_32 : f32 to vector<7x8xf32>
    %164 = arith.addf %162, %163 : vector<7x8xf32>
    %165 = tpu.reciprocal %164 {approx = true} : vector<7x8xf32> -> vector<7x8xf32>
    %166 = arith.mulf %161, %165 : vector<7x8xf32>
    %167 = arith.addf %159, %166 : vector<7x8xf32>
    %168 = vector.extract_strided_slice %56 {offsets = [0, 0], sizes = [7, 8], strides = [1, 1]} : vector<8x8xf32> to vector<7x8xf32>
    %169 = arith.mulf %167, %168 : vector<7x8xf32>
    %170 = vector.shape_cast %169 : vector<7x8xf32> to vector<1x7x8xf32>
    %cst_33 = arith.constant dense<0.000000e+00> : vector<1xf32>
    %171 = vector.multi_reduction <add>, %170, %cst_33 [1, 2] : vector<1x7x8xf32> to vector<1xf32>
    %172 = vector.shape_cast %171 : vector<1xf32> to vector<1x1x1xf32>
    %173 = vector.extract %172[0, 0, 0] : f32 from vector<1x1x1xf32>
    %cst_34 = arith.constant 8.000000e+00 : f32
    %174 = arith.mulf %cst_34, %1 : f32
    %cst_35 = arith.constant 1.000000e+00 : f32
    %175 = arith.divf %cst_35, %174 : f32
    %176 = arith.mulf %173, %175 : f32
    %177 = tpu.iota {dimensions = array<i32: 1>} : vector<8x128xi32>
    %c0_i32 = arith.constant 0 : i32
    %178 = vector.broadcast %c0_i32 : i32 to vector<8x128xi32>
    %179 = arith.cmpi eq, %177, %178 : vector<8x128xi32>
    %c1_i32 = arith.constant 1 : i32
    %180 = vector.broadcast %c1_i32 : i32 to vector<8x128xi32>
    %181 = arith.cmpi eq, %177, %180 : vector<8x128xi32>
    %c2_i32 = arith.constant 2 : i32
    %182 = vector.broadcast %c2_i32 : i32 to vector<8x128xi32>
    %183 = arith.cmpi eq, %177, %182 : vector<8x128xi32>
    %c3_i32 = arith.constant 3 : i32
    %184 = vector.broadcast %c3_i32 : i32 to vector<8x128xi32>
    %185 = arith.cmpi eq, %177, %184 : vector<8x128xi32>
    %cst_36 = arith.constant 0.000000e+00 : f32
    %186 = vector.broadcast %83 : f32 to vector<8x128xf32>
    %187 = vector.broadcast %cst_36 : f32 to vector<8x128xf32>
    %188 = arith.select %185, %186, %187 : vector<8x128xi1>, vector<8x128xf32>
    %189 = vector.broadcast %176 : f32 to vector<8x128xf32>
    %190 = arith.select %183, %189, %188 : vector<8x128xi1>, vector<8x128xf32>
    %191 = vector.broadcast %73 : f32 to vector<8x128xf32>
    %192 = arith.select %181, %191, %190 : vector<8x128xi1>, vector<8x128xf32>
    %193 = vector.broadcast %43 : f32 to vector<8x128xf32>
    %194 = arith.select %179, %193, %192 : vector<8x128xi1>, vector<8x128xf32>
    %c0_37 = arith.constant 0 : index
    %c0_38 = arith.constant 0 : index
    %c0_39 = arith.constant 0 : index
    %195 = vector.load %arg5[%c0_37, %c0_38, %c0_39] : memref<1x8x128xf32, #tpu.memory_space<vmem>>, vector<1x8x128xf32>
    %196 = vector.shape_cast %195 : vector<1x8x128xf32> to vector<8x128xf32>
    %197 = vector.shape_cast %194 : vector<8x128xf32> to vector<1x8x128xf32>
    tpu.vector_store %arg5[%c0_37, %c0_38, %c0_39], %197 {strides = array<i32>} : memref<1x8x128xf32, #tpu.memory_space<vmem>>, vector<1x8x128xf32>,
    return
  }
  func.func @transform_0(%arg0: i32, %arg1: memref<2xi32, #tpu.memory_space<smem>>) -> (i32, i32, i32, i32) {
    %c0_i32 = arith.constant 0 : i32
    %c0_i32_0 = arith.constant 0 : i32
    %c0_i32_1 = arith.constant 0 : i32
    %c0_i32_2 = arith.constant 0 : i32
    return %arg0, %c0_i32, %c0_i32_0, %c0_i32_1 : i32, i32, i32, i32
  }
  func.func @transform_1(%arg0: i32, %arg1: memref<2xi32, #tpu.memory_space<smem>>) -> (i32, i32, i32, i32) {
    %c0_i32 = arith.constant 0 : i32
    %c0_i32_0 = arith.constant 0 : i32
    %c0_i32_1 = arith.constant 0 : i32
    %c0_i32_2 = arith.constant 0 : i32
    return %arg0, %c0_i32, %c0_i32_0, %c0_i32_1 : i32, i32, i32, i32
  }
  func.func @transform_2(%arg0: i32, %arg1: memref<2xi32, #tpu.memory_space<smem>>) -> (i32, i32, i32) {
    %c0_i32 = arith.constant 0 : i32
    %c0_i32_0 = arith.constant 0 : i32
    %c0_i32_1 = arith.constant 0 : i32
    return %arg0, %c0_i32, %c0_i32_0 : i32, i32, i32
  }
  func.func @transform_3(%arg0: i32, %arg1: memref<2xi32, #tpu.memory_space<smem>>) -> (i32, i32, i32) {
    %c0_i32 = arith.constant 0 : i32
    %c0_i32_0 = arith.constant 0 : i32
    %c0_i32_1 = arith.constant 0 : i32
    return %arg0, %c0_i32, %c0_i32_0 : i32, i32, i32
  }
}

</mosaic_0001>

<bundles_post_ra>
// kernel: tpu_custom_call.1
= control target key start
LH: loop header
LB: loop body
LE: loop exit
PB: predicated region body
PF: predicated region fallthrough
CT: control target
= control target key end

     0   :  { %s807_s18 = smov [#allocation3]   ;;  %s1028_s0 = inlined_call_operand.vmem [shape: s32[2], index: 0, kind: input, shape index: {}]   ;;  %s1029_s1 = inlined_call_operand.vmem [shape: f32[3,2,8,4], index: 1, kind: input, shape index: {}]   ;;  %s1030_s2 = inlined_call_operand.vmem [shape: s32[3,2,8,1], index: 2, kind: input, shape index: {}]   ;;  %s1031_s3 = inlined_call_operand.vmem [shape: f32[3,64,8], index: 3, kind: input, shape index: {}]   ;;  %s1032_s4 = inlined_call_operand.hbm [shape: f32[3,8,128], index: 4, kind: output, shape index: {}]  }
   0x1   :  { %s10_s17 = sshll.u32 %s1028_s0, 4  ;;  %s11_s17 = int_to_ptr.vmem [resolvable:$true] %s10_s17 }
   0x2   :  { %13 = dma.vmem_to_smem %s11_s17, 16, %s807_s18, [#allocation2] }
   0x3   :  { %785 = dma.done.wait [#allocation2], 16 }
   0x4   :  { %786 = vsyncadd [#allocation2], 4294967280 }
   0x5   :  { %16 = sfence }
   0x6   :  { %17 = vsyncpa [#allocation5], 0 }
   0x7   :  { %19 = vsyncpa [#allocation5 + $0x1], 0  ;;  %s838_s19 = smov 0   ;;  %s840_s20 = smov 0  }
   0x8   :  { %s842_s21 = smov 0   ;;  %s844_s22 = smov 0  }
   0x9 LB: > { %s859_s0 = sadd.s32 4294967295, %s805_s22   ;;  %s628_s23 = sadd.s32 4294967294, %s805_s22   ;;  %s805_s22 = sphi %s844_s22, %s1042_s22   ;;  %s801_s21 = sphi %s842_s21, %s1041_s21   ;;  %s797_s20 = sphi %s840_s20, %s1040_s20   ;;  %s793_s19 = sphi %s838_s19, %s1039_s19  }
   0xa   : > { %s863_s24 = sadd.s32 1, %s805_s22   ;;  %s110_s25 = sadd.s32 1, %s801_s21 }
   0xb   : > { %s107_s26 = ssub.s32 %s805_s22, %s863_s24  ;;  %p120_p0 = scmp.ne.s32.totalorder %s801_s21, %s797_s20 }
   0xc   : > { %p108_p1 = scmp.eq.s32.totalorder %s107_s26, 0  ;;  %p121_p2 = scmp.eq.s32.totalorder %s859_s0, 2 }
   0xd   : > { %p126_p3 = scmp.ne.s32.totalorder %s797_s20, %s793_s19  ;;  %p127_p4 = scmp.eq.s32.totalorder %s628_s23, 2 }
   0xe   : > { %s874_s27 = scalar_select %p108_p1, %s801_s21, %s110_s25  }
   0xf   : > { %p876_p5 = por %p121_p2, %p120_p0  ;;  %p880_p6 = por %p127_p4, %p126_p3 }
  0x10   : > { %p631_p7 = scmp.ge.s32.totalorder %s805_s22, 1  ;;  %p169_p8 = scmp.lt.s32.totalorder %s805_s22, 4 }
  0x12   : > { %p170_p9 = pnand %p631_p7, %p169_p8 }
  0x13   : > { %p203_p10 = scmp.lt.s32.totalorder (!%p170_p9), %s859_s0, 2  ;;  %s925_s16 = sld [smem:[#allocation3 + $0x1]] (!%p170_p9) }
  0x14   : > { %173 = sbr.rel (%p170_p9) target bundleno = 369 (0x171), region = 32  ;;  %s218_s17 = sld [smem:[#allocation3]] (!%p170_p9) }
  0x15   : > { %s1033_s25 = sand.u32 (!%p170_p9), 1, %s797_s20   ;;  %s644_s7 = sshll.u32 (!%p170_p9), %s859_s0, 3 }
  0x19   : > { %v808_v0 = vmov 0   ;;  %s204_s30 = scalar_select %p203_p10, %s859_s0, 2  ;;  %v223_v34 = vlaneseq  ;;  %v334_v46 = vstv %s925_s16  ;;  %vm344_vm1 = vcmask 64512  }
  0x1a   : > { %704 = vset.pattern.permute.xlu0 %v808_v0  ;;  %vm488_vm2 = vcmask 63488   ;;  %vm295_vm9 = vcmask 31744   ;;  %s219_s18 = scvt.s32.f32 %s218_s17 }
  0x1b   : > { %s647_s5 = sshll.u32 %s204_s30, 4  ;;  %s649_s9 = sshll.u32 %s204_s30, 6  ;;  %v944_v50 = vand.u32 127, %v223_v34 }
  0x1c   : > { %s212_s8 = scalar_lea.vmem %s1030_s2, %s647_s5  ;;  %s894_s12 = scalar_lea.vmem %s1031_s3, %s649_s9 }
  0x1d   : > { %v225_v1 = vld [vmem:[%s212_s8] sm:$0xff]  ;;  %v226_v2 = vld [vmem:[%s212_s8 + $0x8] sm:$0xff]  ;;  %v903_v5 = vld [vmem:[%s894_s12 + $0x10] sm:$0xff]  ;;  %s207_s15 = scalar_lea.vmem %s1029_s1, %s647_s5  ;;  %vm335_vm0 = vcmp.lt.s32.totalorder %v944_v50, %v334_v46  ;;  %s391_s23 = smul.f32 8.0, %s219_s18 }
  0x1e   : > { %228 = vperm.xlu0 %704, %v225_v1   ;;  %v897_v3 = vld [vmem:[%s894_s12] sm:$0xff]  ;;  %v900_v4 = vld [vmem:[%s894_s12 + $0x8] sm:$0xff]  ;;  %v906_v6 = vld [vmem:[%s894_s12 + $0x18] sm:$0xff]  ;;  %v421_v9 = vrot.slane %v903_v5, 1  ;;  %s988_s5 = sshll.u32 %s1033_s25, 3 }
  0x1f   : > { %v411_v7 = vrot.slane %v897_v3, 1  ;;  %v416_v8 = vrot.slane %v900_v4, 1  ;;  %v426_v10 = vrot.slane %v906_v6, 1  ;;  %v923_v19 = vld [vmem:[%s207_s15] sm:$0xff]  ;;  %v936_v29 = vld [vmem:[%s207_s15 + $0x8] sm:$0xff]  ;;  %v332_v60 = vld [vmem:[%s894_s12 + $0x30] sm:$0xff] }
  0x20   : > { %v423_v15 = vmin.f32 %v903_v5, %v421_v9  ;;  %v424_v16 = vmax.f32 %v903_v5, %v421_v9  ;;  %v239_v27 = vand.u32 2147483647, %v923_v19  ;;  %v240_v38 = vand.u32 2147483647, %v936_v29  ;;  %v330_v58 = vld [vmem:[%s894_s12 + $0x20] sm:$0xff]  ;;  %v331_v59 = vld [vmem:[%s894_s12 + $0x28] sm:$0xff] }
  0x21   : > { %v413_v11 = vmin.f32 %v897_v3, %v411_v7  ;;  %v414_v12 = vmax.f32 %v897_v3, %v411_v7  ;;  %v418_v13 = vmin.f32 %v900_v4, %v416_v8  ;;  %v419_v14 = vmax.f32 %v900_v4, %v416_v8  ;;  %v333_v0 = vld [vmem:[%s894_s12 + $0x38] sm:$0xff]  ;;  %s202_s0 = scalar_lea.vmem [#allocation4], %s988_s5 }
  0x22   : > { %v428_v17 = vmin.f32 %v906_v6, %v426_v10  ;;  %v429_v18 = vmax.f32 %v906_v6, %v426_v10  ;;  %v931_v26 = vsub.f32 %v424_v16, %v423_v15  ;;  %v241_v39 = vsub.f32 0.0, %v239_v27 }
  0x23   : > { %v434_v20 = vmin.f32 %v414_v12, %v424_v16  ;;  %v435_v21 = vmax.f32 %v413_v11, %v423_v15  ;;  %v927_v24 = vsub.f32 %v414_v12, %v413_v11  ;;  %v929_v25 = vsub.f32 %v419_v14, %v418_v13 }
  0x24   : > { %v438_v22 = vmin.f32 %v419_v14, %v429_v18  ;;  %v439_v23 = vmax.f32 %v418_v13, %v428_v17  ;;  %v934_v28 = vsub.f32 %v429_v18, %v428_v17  ;;  %v450_v37 = vmax.f32 %v414_v12, %v424_v16 }
  0x25   : > { %v436_v30 = vsub.f32 %v434_v20, %v435_v21  ;;  %v443_v32 = vmul.f32 %v929_v25, %v927_v24  ;;  %v451_v41 = vmin.f32 %v413_v11, %v423_v15  ;;  %v453_v43 = vmax.f32 %v419_v14, %v429_v18 }
  0x26   : > { %231 = vperm.xlu0 %704, %v226_v2   ;;  %v440_v31 = vsub.f32 %v438_v22, %v439_v23  ;;  %v444_v33 = vmul.f32 %v934_v28, %v931_v26  ;;  %v454_v45 = vmin.f32 %v418_v13, %v428_v17  ;;  %v242_v48 = vsub.f32 0.0, %v240_v38 }
  0x27   : > { %v437_v35 = vmax.f32 %v436_v30, 0.0  ;;  %v452_v44 = vsub.f32 %v450_v37, %v451_v41  ;;  %v243_v49 = vmul.f32 1.442695, %v241_v39  ;;  %v460_v54 = vadd.f32 %v414_v12, %v413_v11 }
  0x28   : > { %v441_v36 = vmax.f32 %v440_v31, 0.0  ;;  %v445_v40 = vadd.f32 %v444_v33, %v443_v32  ;;  %v455_v51 = vsub.f32 %v453_v43, %v454_v45  ;;  %v461_v55 = vadd.f32 %v424_v16, %v423_v15 }
  0x29   : > { %v456_v53 = vmul.f32 %v452_v44, %v452_v44  ;;  %v465_v57 = vadd.f32 %v419_v14, %v418_v13  ;;  %v466_v62 = vadd.f32 %v429_v18, %v428_v17  ;;  %v245_v63 = vmul.f32 1.442695, %v242_v48 }
  0x2a   : > { %v442_v42 = vmul.f32 %v441_v36, %v437_v35  ;;  %v457_v56 = vmul.f32 %v455_v51, %v455_v51  ;;  %v462_v61 = vsub.f32 %v460_v54, %v461_v55  ;;  %v373_v1 = vsub.f32 %v330_v58, %v332_v60 }
  0x2b   : > { %v809_v2 = vmov 0.0   ;;  %v374_v8 = vsub.f32 %v331_v59, %v333_v0  ;;  %v467_v12 = vsub.f32 %v465_v57, %v466_v62  ;;  %v477_v15 = vadd.f32 1e-07, %v456_v53 }
  0x2c   : > { %v446_v47 = vsub.f32 %v445_v40, %v442_v42  ;;  %v952_v7 = vsel %vm335_vm0, 1.0, %v809_v2  ;;  %v458_v9 = vadd.f32 %v457_v56, %v456_v53  ;;  %v375_v10 = vand.u32 2147483647, %v373_v1 }
  0x2d   : > { %v463_v11 = vmul.f32 %v462_v61, %v462_v61  ;;  %v376_v13 = vand.u32 2147483647, %v374_v8  ;;  %v468_v18 = vmul.f32 %v467_v12, %v467_v12  ;;  %v483_v22 = vadd.f32 1e-07, %v457_v56 }
  0x2e   : > { %v447_v52 = vadd.f32 1e-07, %v446_v47  ;;  %v459_v14 = vadd.f32 1e-07, %v458_v9  ;;  %v377_v16 = vmul.f32 %v952_v7, %v375_v10  ;;  %v475_v31 = vsub.f32 %v927_v24, %v931_v26 }
  0x2f   : > { %v464_v17 = vmul.f32 0.25, %v463_v11  ;;  %v378_v21 = vmul.f32 %v952_v7, %v376_v13  ;;  %v469_v30 = vmul.f32 0.25, %v468_v18  ;;  %v481_v34 = vsub.f32 %v929_v25, %v934_v28 }
  0x30   : > { %705 = vrcp.f32 %v447_v52  ;;  %v379_v23 = vsel %vm344_vm1, %v377_v16, 0.0  ;;  %v476_v40 = vmul.f32 %v475_v31, %v475_v31  ;;  %vm247_vm4 = vcmp.ge.f32.partialorder %v923_v19, 0.0 }
  0x31   : > { %707 = vpow2.f32 %v243_v49  ;;  %v380_v33 = vsel %vm344_vm1, %v378_v21, 0.0  ;;  %v470_v36 = vadd.f32 %v469_v30, %v464_v17  ;;  %v257_v56 = vmax.f32 %v923_v19, 0.0 }
  0x32   : > { %709 = vpow2.f32 %v245_v63  ;;  %v381_v35 = vadd.f32 %v380_v33, %v379_v23  ;;  %vm248_vm5 = vcmp.ge.f32.partialorder %v936_v29, 0.0  ;;  %v338_v33 = vsub.f32 %v897_v3, %v903_v5 }
  0x33   : > { %711 = vrcp.f32 %v459_v14 }
  0x34   : > { %713 = vrcp.f32 %v477_v15  ;;  %382 = vadd.xlane.f32.xlu2 %v381_v35 }
  0x35   : > { %715 = vrcp.f32 %v483_v22 }
  0x36   : > { %v706_v20 = vpop.eup %705 }
  0x37   : > { %v449_v27 = vmul.f32 %v706_v20, %v442_v42  ;;  %v708_v32 = vpop.eup %707  ;;  %v482_v42 = vmul.f32 %v481_v34, %v481_v34  ;;  %v258_v20 = vmax.f32 %v936_v29, 0.0 }
  0x38   : > { %v710_v37 = vpop.eup %709  ;;  %v251_v38 = vadd.f32 1.0, %v708_v32  ;;  %v266_v45 = vmul.f32 -0.5, %v708_v32  ;;  %v269_v52 = vand.u32 2147483647, %v708_v32  ;;  %v249_v1 = vsel %vm247_vm4, 1.0, %v708_v32 }
  0x39   : > { %v471_v39 = vsub.f32 1.0, %v449_v27  ;;  %v712_v41 = vpop.eup %711  ;;  %v252_v44 = vadd.f32 1.0, %v710_v37  ;;  %v275_v54 = vmul.f32 -0.5, %v710_v37  ;;  %v250_v11 = vsel %vm248_vm5, 1.0, %v710_v37 }
  0x3a   : > { %717 = vlog2.f32 %v251_v38  ;;  %v473_v43 = vmul.f32 %v712_v41, %v470_v36  ;;  %v714_v24 = vpop.eup %713  ;;  %v267_v49 = vadd.f32 1.0, %v266_v45  ;;  %vm969_vm6 = vcmp.lt.f32.partialorder %v269_v52, 0.0004427343 }
  0x3b   : > { %v716_v26 = vpop.eup %715  ;;  %v479_v47 = vmul.f32 %v714_v24, %v476_v40  ;;  %719 = vrcp.f32 %v251_v38  ;;  %v276_v8 = vadd.f32 1.0, %v275_v54  ;;  %v278_v12 = vand.u32 2147483647, %v710_v37 }
  0x3c   : > { %v474_v46 = vadd.f32 %v473_v43, %v471_v39  ;;  %v485_v48 = vmul.f32 %v716_v26, %v482_v42  ;;  %721 = vrcp.f32 %v252_v44  ;;  %v268_v59 = vmul.f32 %v708_v32, %v267_v49 }
  0x3d   : > { %723 = vlog2.f32 %v252_v44  ;;  %v277_v18 = vmul.f32 %v710_v37, %v276_v8  ;;  %vm279_vm8 = vcmp.lt.f32.partialorder %v278_v12, 0.0004427343  ;;  %v340_v37 = vsub.f32 %v900_v4, %v906_v6 }
  0x3e   : > { %v480_v25 = vadd.f32 %v479_v47, %v474_v46  ;;  %v339_v41 = vand.u32 2147483647, %v338_v33  ;;  %v308_v4 = vstv %s219_s18  ;;  %s540_s18 = scalar_lea.hbm %s1032_s4, %s644_s7  ;;  %vm517_vm4 = vcmp.eq.s32.totalorder %v944_v50, 1 }
  0x3f   : > { %v341_v24 = vand.u32 2147483647, %v340_v37  ;;  %725 = vrcp.f32 %v308_v4  ;;  %vm314_vm10 = vweird.f32 %v308_v4  ;;  %vm516_vm5 = vcmp.eq.s32.totalorder %v944_v50, 0 }
  0x40   : > { %v718_v28 = vpop.eup %717  ;;  %v486_v51 = vadd.f32 %v485_v48, %v480_v25  ;;  %v392_v48 = vstv %s391_s23 }
  0x41   : > { %v265_v57 = vmul.f32 0.6931472, %v718_v28  ;;  %v720_v61 = vpop.eup %719  ;;  %v342_v45 = vadd.f32 %v341_v24, %v339_v41  ;;  %727 = vrcp.f32 %v392_v48  ;;  %vm398_vm14 = vweird.f32 %v392_v48 }
  0x42   : > { %v487_v55 = vmul.f32 %v952_v7, %v486_v51  ;;  %v722_v0 = vpop.eup %721  ;;  %v255_v14 = vmul.f32 %v720_v61, %v249_v1 }
  0x43   : > { %v724_v9 = vpop.eup %723  ;;  %v271_v13 = vsel %vm969_vm6, %v268_v59, %v265_v57  ;;  %v256_v17 = vmul.f32 %v722_v0, %v250_v11  ;;  %v343_v5 = vmul.f32 %v952_v7, %v342_v45  ;;  %v320_v57 = vand.u32 2147483648, %v308_v4 }
  0x44   : > { %v489_v60 = vsel %vm488_vm2, %v487_v55, 0.0  ;;  %vm519_vm2 = vcmp.eq.s32.totalorder %v944_v50, 3 }
  0x45   : > { %490 = vadd.xlane.f32.xlu2 %v489_v60  ;;  %v345_v46 = vsel %vm344_vm1, %v343_v5, 0.0  ;;  %v726_v6 = vpop.eup %725  ;;  %v318_v60 = vand.u32 2147483647, %v308_v4  ;;  %v321_v1 = vor.u32 1.1754944e-38, %v320_v57 }
  0x46   : > { %v310_v25 = vmul.f32 %v726_v6, %v308_v4  ;;  %vm315_vm11 = vweird.f32 %v726_v6 }
  0x47   : > { %v728_v49 = vpop.eup %727  ;;  %vm316_vm12 = vmor %vm314_vm10, %vm315_vm11  ;;  %vm319_vm13 = vcmp.eq.f32.partialorder %v318_v60, 8.507059e+37 }
  0x48   : > { %v311_v28 = vsub.f32 1.0, %v310_v25  ;;  %v394_v55 = vmul.f32 %v728_v49, %v392_v48  ;;  %vm399_vm15 = vweird.f32 %v728_v49 }
  0x49   : > { %vm400_vm0 = vmor %vm398_vm14, %vm399_vm15 }
  0x4a   : > { %v312_v52 = vmul.f32 %v726_v6, %v311_v28  ;;  %v395_v63 = vsub.f32 1.0, %v394_v55 }
  0x4c   : > { %v313_v59 = vadd.f32 %v726_v6, %v312_v52 }
  0x90   : > { %v229_v53 = vpop.permute.xlu0 %228 }
  0x91   : > { %vm233_vm3 = vcmp.eq.s32.totalorder %v944_v50, %v229_v53 }
  0x92   : > { %v640_v58 = vsel %vm233_vm3, 1.0, %v809_v2  ;;  %vm518_vm3 = vcmp.eq.s32.totalorder %v944_v50, 2 }
  0x93   : > { %v259_v62 = vmul.f32 %v640_v58, %v923_v19  ;;  %v285_v15 = vmul.f32 -0.5, %v640_v58  ;;  %v274_v19 = vmul.f32 0.6931472, %v724_v9  ;;  %v283_v23 = vsub.f32 %v255_v14, %v640_v58 }
  0x94   : > { %v317_v9 = vsel %vm316_vm12, %v726_v6, %v313_v59  ;;  %v396_v14 = vmul.f32 %v728_v49, %v395_v63 }
  0x95   : > { %v261_v10 = vsub.f32 %v257_v56, %v259_v62  ;;  %v287_v27 = vadd.f32 0.75, %v285_v15  ;;  %v280_v32 = vsel %vm279_vm8, %v277_v18, %v274_v19  ;;  %v291_v38 = vmul.f32 %v283_v23, %v283_v23 }
  0x96   : > { %v402_v23 = vand.u32 2147483647, %v392_v48 }
  0x97   : > { %v281_v21 = vadd.f32 %v271_v13, %v261_v10 }
  0x98   : > { %v232_v16 = vpop.permute.xlu0 %231  ;;  %vm403_vm1 = vcmp.eq.f32.partialorder %v402_v23, 8.507059e+37 }
  0x99   : > { %vm234_vm7 = vcmp.eq.s32.totalorder %v944_v50, %v232_v16  ;;  %v289_v36 = vmul.f32 %v287_v27, %v281_v21  ;;  %v322_v16 = vsel %vm319_vm13, %v321_v1, %v317_v9 }
  0x9a   : > { %v641_v22 = vsel %vm234_vm7, 1.0, %v809_v2 }
  0x9b   : > { %v260_v30 = vmul.f32 %v641_v22, %v936_v29  ;;  %v286_v31 = vmul.f32 -0.5, %v641_v22  ;;  %v284_v35 = vsub.f32 %v256_v17, %v641_v22  ;;  %v293_v43 = vmul.f32 %v291_v38, %v289_v36 }
  0x9c   : > { %v397_v22 = vadd.f32 %v728_v49, %v396_v14 }
  0x9d   : > { %v262_v34 = vsub.f32 %v258_v20, %v260_v30  ;;  %v288_v39 = vadd.f32 0.75, %v286_v31  ;;  %v292_v2 = vmul.f32 %v284_v35, %v284_v35  ;;  %v296_v26 = vsel %vm295_vm9, %v293_v43, 0.0 }
  0x9e   : > { %v404_v20 = vand.u32 2147483648, %v392_v48 }
  0x9f   : > { %v282_v40 = vadd.f32 %v280_v32, %v262_v34  ;;  %v401_v34 = vsel %vm400_vm0, %v728_v49, %v397_v22 }
  0xa0   : > { %v405_v32 = vor.u32 1.1754944e-38, %v404_v20 }
  0xa1   : > { %v290_v42 = vmul.f32 %v288_v39, %v282_v40 }
  0xa2   : > { %v406_v38 = vsel %vm403_vm1, %v405_v32, %v401_v34 }
  0xa3   : > { %v294_v29 = vmul.f32 %v292_v2, %v290_v42 }
  0xa5   : > { %v297_v44 = vsel %vm295_vm9, %v294_v29, 0.0 }
  0xa6   : > { %v298_v3 = vadd.f32 %v297_v44, %v296_v26 }
  0xa7   : > { %v383_v47 = vpop.xlane.xlu2 %382 }
  0xa8   : > { %299 = vadd.xlane.f32.xlu1 %v298_v3  ;;  %v384_v53 = vrot.slane %v383_v47, 4 }
  0xaa   : > { %v385_v61 = vadd.f32 %v384_v53, %v383_v47 }
  0xac   : > { %v386_v10 = vrot.slane %v385_v61, 2 }
  0xae   : > { %v387_v18 = vadd.f32 %v386_v10, %v385_v61 }
  0xb0   : > { %346 = vadd.xlane.f32.xlu1 %v345_v46  ;;  %v388_v31 = vrot.slane %v387_v18, 1 }
  0xb2   : > { %v389_v37 = vadd.f32 %v388_v31, %v387_v18 }
  0xb8   : > { %v491_v51 = vpop.xlane.xlu2 %490 }
  0xb9   : > { %v492_v56 = vrot.slane %v491_v51, 4 }
  0xbb   : > { %v493_v0 = vadd.f32 %v492_v56, %v491_v51 }
  0xbd   : > { %v494_v15 = vrot.slane %v493_v0, 2 }
  0xbf   : > { %v495_v27 = vadd.f32 %v494_v15, %v493_v0 }
  0xc1   : > { %v496_v35 = vrot.slane %v495_v27, 1 }
  0xc3   : > { %v497_v39 = vadd.f32 %v496_v35, %v495_v27 }
 0x11b   : > { %v300_v54 = vpop.xlane.xlu1 %299 }
 0x11c   : > { %v301_v7 = vrot.slane %v300_v54, 4 }
 0x11e   : > { %v302_v58 = vadd.f32 %v301_v7, %v300_v54 }
 0x120   : > { %v303_v62 = vrot.slane %v302_v58, 2 }
 0x122   : > { %v304_v8 = vadd.f32 %v303_v62, %v302_v58 }
 0x123   : > { %v347_v11 = vpop.xlane.xlu1 %346 }
 0x124   : > { %v348_v12 = vrot.slane %v347_v11, 4  ;;  %v305_v13 = vrot.slane %v304_v8, 1 }
 0x126   : > { %v349_v17 = vadd.f32 %v348_v12, %v347_v11  ;;  %v306_v19 = vadd.f32 %v305_v13, %v304_v8 }
 0x128   : > { %v350_v21 = vrot.slane %v349_v17, 2  ;;  %650 = vpush %v306_v19 }
 0x129   : > { %652 = vpush %v322_v16 }
 0x12a   : > { %v351_v30 = vadd.f32 %v350_v21, %v349_v17 }
 0x12c   : > { %v352_v33 = vrot.slane %v351_v30, 1 }
 0x12e   : > { %v353_v36 = vadd.f32 %v352_v33, %v351_v30 }
 0x130   : > { %654 = vpush %v353_v36 }
 0x131   : > { %656 = vpush %v389_v37 }
 0x132   : > { %658 = vpush %v406_v38 }
 0x133   : > { %660 = vpush %v497_v39 }
 0x159   : > { %s651_s26 = spop %650 }
 0x15a   : > { %s653_s30 = spop %652 }
 0x15b   : > { %s371_s6 = smul.f32 5.0, %s653_s30 }
 0x15c   : > { %s324_s9 = smul.f32 2.0, %s653_s30  ;;  %s542_s30 = sshll.u32 %s202_s0, 4  ;;  %s543_s30 = int_to_ptr.vmem [resolvable:$true] %s542_s30 }
 0x15e   : > { %s325_s25 = smul.f32 %s651_s26, %s324_s9  ;;  %s1038_s26 = sand.u32 1, %s797_s20  }
 0x15f   : > { %s530_s7 = scalar_lea.sflag [#allocation5], %s1038_s26 }
 0x160   : > { %v526_v24 = vstv %s325_s25 }
 0x161   : > { %s655_s8 = spop %654 }
 0x162   : > { %s657_s10 = spop %656  ;;  %s372_s11 = smul.f32 %s655_s8, %s371_s6 }
 0x163   : > { %s659_s12 = spop %658  ;;  %s544_s6 = sshll.u32 %s540_s18, 4  ;;  %s545_s6 = int_to_ptr.hbm [resolvable:$true] %s544_s6 }
 0x164   : > { %s408_s13 = smul.f32 0.5, %s659_s12  ;;  %s661_s14 = spop %660  ;;  %v524_v42 = vstv %s372_s11 }
 0x165   : > { %s515_s15 = smul.f32 %s661_s14, %s659_s12  ;;  %s755_s8 = sshra.s32 %s545_s6, 4  ;;  %s756_s8 = int_to_ptr.hbm [resolvable:$true] %s755_s8 }
 0x166   : > { %s409_s23 = smul.f32 %s657_s10, %s408_s13  ;;  %s757_s5 = scalar_lea.hbm %s756_s8, 8 }
 0x167   : > { %v522_v2 = vstv %s515_s15  ;;  %p758_p11 = scmp.ne.s32.totalorder %s756_s8, %s757_s5  ;;  %s761_s11 = scalar_lea.hbm %s1032_s4, 24 }
 0x168   : > { %v520_v40 = vstv %s409_s23  ;;  %p762_p0 = scmp.lt.s32.totalorder %s756_s8, %s1032_s4  ;;  %p763_p1 = scmp.lt.s32.totalorder %s761_s11, %s757_s5 }
 0x169   : > { %v521_v41 = vsel %vm519_vm2, %v520_v40, 0.0  ;;  %p759_p12 = pnand %p758_p11, %p876_p5 }
 0x16a   : > { %v523_v43 = vsel %vm518_vm3, %v522_v2, %v521_v41  ;;  %p764_p2 = por %p763_p1, %p762_p0 }
 0x16b   : > { %v525_v29 = vsel %vm517_vm4, %v524_v42, %v523_v43  ;;  %p760_p13 = pneg %p759_p12 }
 0x16c   : > { %v527_v26 = vsel %vm516_vm5, %v526_v24, %v525_v29 }
 0x16d   : > { %528 = vst [vmem:[%s202_s0] sm:$0xff] %v527_v26  ;;  %p765_p3 = pnand %p764_p2, %p760_p13 }
 0x16f   : > { %768 = shalt.err (!%p765_p3)
}
 0x170   : > { %662 = dma.vmem_to_hbm [thread:$0]  (%p876_p5), %s543_s30, 128, %s545_s6, %s530_s7  }
 0x171 PF: > { %p668_p4 = scmp.ge.s32.totalorder %s805_s22, 2  ;;  %s556_s13 = sand.u32 1, %s793_s19  }
 0x172   : > { %s557_s14 = scalar_lea.sflag [#allocation5], %s556_s13 }
 0x173   : > { %p665_p7 = pnand %p668_p4, %p880_p6 }
 0x175   : > { %p666_p8 = pneg %p665_p7 }
 0x177   : > { %788 = dma.done.wait (%p666_p8), %s557_s14, 128  }
 0x178   : > { %790 = vsyncadd (%p666_p8), %s557_s14, 4294967168  ;;  %p22_p9 = scmp.ge.s32.totalorder %s863_s24, 5   ;;  %s1039_s19 = smov %s797_s20 }
 0x179   : > { %s1040_s20 = smov %s801_s21  ;;  %s1041_s21 = smov %s874_s27 }
 0x17a   : > { %s1042_s22 = smov %s863_s24  ;;  %24 = sbr.rel (!%p22_p9) target bundleno = 9 (0x9), region = 73 }
 0x17f   :  { %563 = vsyncpa [#allocation5], 1 }
 0x180   :  { %565 = vsyncpa [#allocation5 + $0x1], 1 }

</bundles_post_ra>
